<compile_context>
chip_gen: v5e
topology: v5e:2x2
jax: 0.10.0
libtpu: 0.0.40
codegen_flags: <defaults>
</compile_context>

<pallas_src>
import math

import jax
import jax.numpy as jnp
from jax.experimental import pallas as pl
from jax.experimental.pallas import tpu as pltpu

# Problem sizes (match the PyTorch module: input_size=1, hidden_size=10, num_layers=3).
B, T = 2, 8          # batch, sequence length
IN, H, L = 1, 10, 3  # input features, hidden size, num RNN layers
KP = 16              # padded feature/hidden width (multiple of 8 sublanes, >= H)


def demo_rnn_kernel(x_ref, h0_ref, wih_ref, whh_ref, b_ref, wout_ref, bout_ref,
                    out_ref, hout_ref):
    """Single-invocation kernel: full RNN stack + output Linear.

    x_ref    : (T*B, KP)    padded input sequence, time-major rows (t*B + b)
    h0_ref   : (L, B, KP)   padded initial hidden states
    wih_ref  : (L, KP, KP)  W_ih^T per layer (in-dim x out-dim), zero padded
    whh_ref  : (L, KP, KP)  W_hh^T per layer, zero padded
    b_ref    : (L, 1, KP)   b_ih + b_hh per layer, zero padded
    wout_ref : (1, KP)      Linear weight row, zero padded
    bout_ref : (1, 1)       Linear bias
    out_ref  : (T*B, 1)     Linear(flat hidden), rows in time-major (t*B + b) order
    hout_ref : (L, B, KP)   final hidden state per layer (padded)
    """
    layer_in = x_ref[...]                                    # (T*B, KP), stays in vregs
    for l in range(L):                                       # static unroll over layers
        w_ih = wih_ref[l]                                    # (KP, KP)
        w_hh = whh_ref[l]                                    # (KP, KP)
        # Hoisted: input contribution + bias for all T steps in one batched MXU op.
        xw = (jnp.dot(layer_in, w_ih, preferred_element_type=jnp.float32)
              + b_ref[l])                                    # (T*B, KP)
        h = h0_ref[l]                                        # (B, KP)
        outs = []
        for t in range(T):                                   # static unroll over time
            x_t = xw[t * B:(t + 1) * B, :]                   # contiguous sublane block
            h = jnp.tanh(x_t + jnp.dot(h, w_hh, preferred_element_type=jnp.float32))
            outs.append(h)
        hout_ref[l] = h
        layer_in = jnp.concatenate(outs, axis=0)             # (T*B, KP), kept in vregs

    # Final Linear(10 -> 1): VPU broadcast-mul + lane reduction (no N=1 MXU matmul).
    # Output kept (T*B, 1) to mirror PyTorch's view(-1, H) @ W^T; the 16-element
    # masked store is negligible, so the lane-dense-output rewrite is skipped.
    out_ref[...] = (jnp.sum(layer_in * wout_ref[...], axis=-1, keepdims=True)
                    + bout_ref[...])


def init_params(key):
    """Deterministic params matching PyTorch RNN/Linear shapes (uniform +-1/sqrt(H))."""
    bound = 1.0 / math.sqrt(H)
    keys = jax.random.split(key, 4 * L + 2)
    ki = 0
    rnn = []
    for l in range(L):
        in_dim = IN if l == 0 else H
        w_ih = jax.random.uniform(keys[ki], (H, in_dim), jnp.float32, -bound, bound); ki += 1
        w_hh = jax.random.uniform(keys[ki], (H, H), jnp.float32, -bound, bound); ki += 1
        b_ih = jax.random.uniform(keys[ki], (H,), jnp.float32, -bound, bound); ki += 1
        b_hh = jax.random.uniform(keys[ki], (H,), jnp.float32, -bound, bound); ki += 1
        rnn.append((w_ih, w_hh, b_ih, b_hh))
    w_out = jax.random.uniform(keys[ki], (1, H), jnp.float32, -bound, bound); ki += 1
    b_out = jax.random.uniform(keys[ki], (1,), jnp.float32, -bound, bound)
    return {"rnn": rnn, "linear": (w_out, b_out)}


def demo_rnn_forward(x, hidden, params):
    """Glue: pad to KP lanes, reorder to time-major, call the kernel, un-pad/reorder."""
    # Time-major flat input rows (t*B + b), padded to KP lanes.
    x_tb = jnp.transpose(x, (1, 0, 2)).reshape(T * B, IN)
    x_p = jnp.zeros((T * B, KP), jnp.float32).at[:, :IN].set(x_tb)
    h0_p = jnp.zeros((L, B, KP), jnp.float32).at[:, :, :H].set(hidden)

    wih_p = jnp.zeros((L, KP, KP), jnp.float32)
    whh_p = jnp.zeros((L, KP, KP), jnp.float32)
    b_p = jnp.zeros((L, 1, KP), jnp.float32)
    for l in range(L):
        w_ih, w_hh, b_ih, b_hh = params["rnn"][l]
        in_dim = w_ih.shape[1]
        wih_p = wih_p.at[l, :in_dim, :H].set(w_ih.T)
        whh_p = whh_p.at[l, :H, :H].set(w_hh.T)
        b_p = b_p.at[l, 0, :H].set(b_ih + b_hh)

    w_out, b_out = params["linear"]
    wout_p = jnp.zeros((1, KP), jnp.float32).at[0, :H].set(w_out[0])
    bout_p = b_out.reshape(1, 1).astype(jnp.float32)

    vmem = pl.BlockSpec(memory_space=pltpu.MemorySpace.VMEM)
    out_tb, hout_p = pl.pallas_call(
        demo_rnn_kernel,
        out_shape=(jax.ShapeDtypeStruct((T * B, 1), jnp.float32),
                   jax.ShapeDtypeStruct((L, B, KP), jnp.float32)),
        in_specs=[vmem] * 7,
        out_specs=(vmem, vmem),
    )(x_p, h0_p, wih_p, whh_p, b_p, wout_p, bout_p)

    # Kernel rows are time-major (t*B + b); PyTorch's output.view(-1, H) is (b*T + t).
    out = out_tb.reshape(T, B).T.reshape(B * T, 1)
    return out, hout_p[:, :, :H]


def reference_forward(x, hidden, params):
    """Pure-JAX reference mirroring torch.nn.RNN(tanh) + Linear."""
    layer_in = x
    h_finals = []
    for l in range(L):
        w_ih, w_hh, b_ih, b_hh = params["rnn"][l]
        h = hidden[l]
        outs = []
        for t in range(T):
            h = jnp.tanh(layer_in[:, t, :] @ w_ih.T + b_ih + h @ w_hh.T + b_hh)
            outs.append(h)
        h_finals.append(h)
        layer_in = jnp.stack(outs, axis=1)
    w_out, b_out = params["linear"]
    out = layer_in.reshape(-1, H) @ w_out.T + b_out
    return out, jnp.stack(h_finals, axis=0)


if __name__ == "__main__":
    key = jax.random.PRNGKey(0)
    kx, kh, kp = jax.random.split(key, 3)

    x = jax.random.normal(kx, (B, T, IN), jnp.float32)        # (batch, seq, input_size)
    hidden = jax.random.normal(kh, (L, B, H), jnp.float32)    # (num_layers, batch, hidden)
    params = init_params(kp)

    out, h_out = demo_rnn_forward(x, hidden, params)
    out, h_out = jax.block_until_ready((out, h_out))

    ref_out, ref_h = reference_forward(x, hidden, params)
    assert out.shape == (B * T, 1) and h_out.shape == (L, B, H)
    assert jnp.allclose(out, ref_out, atol=1e-4, rtol=1e-4), "output mismatch vs reference"
    assert jnp.allclose(h_out, ref_h, atol=1e-4, rtol=1e-4), "hidden-state mismatch vs reference"

    print("KERNEL_OK")
</pallas_src>

<mosaic_0001>
module attributes {stable_mosaic.version = 11 : i64} {
  func.func @demo_rnn_kernel(%arg0: memref<16x16xf32, #tpu.memory_space<vmem>>, %arg1: memref<3x2x16xf32, #tpu.memory_space<vmem>>, %arg2: memref<3x16x16xf32, #tpu.memory_space<vmem>>, %arg3: memref<3x16x16xf32, #tpu.memory_space<vmem>>, %arg4: memref<3x1x16xf32, #tpu.memory_space<vmem>>, %arg5: memref<1x16xf32, #tpu.memory_space<vmem>>, %arg6: memref<1x1xf32, #tpu.memory_space<vmem>>, %arg7: memref<16x1xf32, #tpu.memory_space<vmem>>, %arg8: memref<3x2x16xf32, #tpu.memory_space<vmem>>) attributes {dimension_semantics = [], scalar_prefetch = 0 : i64, scratch_operands = 0 : i64, tpu.core_type = #tpu.core_type<tc>} {
    %c0 = arith.constant 0 : index
    %c0_0 = arith.constant 0 : index
    %0 = vector.load %arg0[%c0, %c0_0] : memref<16x16xf32, #tpu.memory_space<vmem>>, vector<16x16xf32>
    %c0_1 = arith.constant 0 : index
    %c0_2 = arith.constant 0 : index
    %c0_3 = arith.constant 0 : index
    %1 = vector.load %arg2[%c0_1, %c0_2, %c0_3] : memref<3x16x16xf32, #tpu.memory_space<vmem>>, vector<1x16x16xf32>
    %2 = vector.shape_cast %1 : vector<1x16x16xf32> to vector<16x16xf32>
    %c0_4 = arith.constant 0 : index
    %c0_5 = arith.constant 0 : index
    %c0_6 = arith.constant 0 : index
    %3 = vector.load %arg3[%c0_4, %c0_5, %c0_6] : memref<3x16x16xf32, #tpu.memory_space<vmem>>, vector<1x16x16xf32>
    %4 = vector.shape_cast %3 : vector<1x16x16xf32> to vector<16x16xf32>
    %cst = arith.constant dense<0.000000e+00> : vector<16x16xf32>
    %5 = tpu.matmul %0, %2, %cst {dimension_numbers = #tpu.dot_dimension_numbers<[1], [0], [0], [1], [0, 0, 1, 1], [], []>} : vector<16x16xf32>, vector<16x16xf32>, vector<16x16xf32> -> vector<16x16xf32>
    %c0_7 = arith.constant 0 : index
    %c0_8 = arith.constant 0 : index
    %c0_9 = arith.constant 0 : index
    %6 = vector.load %arg4[%c0_7, %c0_8, %c0_9] : memref<3x1x16xf32, #tpu.memory_space<vmem>>, vector<1x1x16xf32>
    %7 = vector.shape_cast %6 : vector<1x1x16xf32> to vector<1x16xf32>
    %8 = vector.broadcast %7 : vector<1x16xf32> to vector<16x16xf32>
    %9 = arith.addf %5, %8 : vector<16x16xf32>
    %c0_10 = arith.constant 0 : index
    %c0_11 = arith.constant 0 : index
    %c0_12 = arith.constant 0 : index
    %10 = vector.load %arg1[%c0_10, %c0_11, %c0_12] : memref<3x2x16xf32, #tpu.memory_space<vmem>>, vector<1x2x16xf32>
    %11 = vector.shape_cast %10 : vector<1x2x16xf32> to vector<2x16xf32>
    %12 = vector.extract_strided_slice %9 {offsets = [0, 0], sizes = [2, 16], strides = [1, 1]} : vector<16x16xf32> to vector<2x16xf32>
    %cst_13 = arith.constant dense<0.000000e+00> : vector<2x16xf32>
    %13 = tpu.matmul %11, %4, %cst_13 {dimension_numbers = #tpu.dot_dimension_numbers<[1], [0], [0], [1], [0, 0, 1, 1], [], []>} : vector<2x16xf32>, vector<16x16xf32>, vector<2x16xf32> -> vector<2x16xf32>
    %14 = arith.addf %12, %13 : vector<2x16xf32>
    %15 = math.tanh %14 : vector<2x16xf32>
    %16 = vector.extract_strided_slice %9 {offsets = [2, 0], sizes = [2, 16], strides = [1, 1]} : vector<16x16xf32> to vector<2x16xf32>
    %cst_14 = arith.constant dense<0.000000e+00> : vector<2x16xf32>
    %17 = tpu.matmul %15, %4, %cst_14 {dimension_numbers = #tpu.dot_dimension_numbers<[1], [0], [0], [1], [0, 0, 1, 1], [], []>} : vector<2x16xf32>, vector<16x16xf32>, vector<2x16xf32> -> vector<2x16xf32>
    %18 = arith.addf %16, %17 : vector<2x16xf32>
    %19 = math.tanh %18 : vector<2x16xf32>
    %20 = vector.extract_strided_slice %9 {offsets = [4, 0], sizes = [2, 16], strides = [1, 1]} : vector<16x16xf32> to vector<2x16xf32>
    %cst_15 = arith.constant dense<0.000000e+00> : vector<2x16xf32>
    %21 = tpu.matmul %19, %4, %cst_15 {dimension_numbers = #tpu.dot_dimension_numbers<[1], [0], [0], [1], [0, 0, 1, 1], [], []>} : vector<2x16xf32>, vector<16x16xf32>, vector<2x16xf32> -> vector<2x16xf32>
    %22 = arith.addf %20, %21 : vector<2x16xf32>
    %23 = math.tanh %22 : vector<2x16xf32>
    %24 = vector.extract_strided_slice %9 {offsets = [6, 0], sizes = [2, 16], strides = [1, 1]} : vector<16x16xf32> to vector<2x16xf32>
    %cst_16 = arith.constant dense<0.000000e+00> : vector<2x16xf32>
    %25 = tpu.matmul %23, %4, %cst_16 {dimension_numbers = #tpu.dot_dimension_numbers<[1], [0], [0], [1], [0, 0, 1, 1], [], []>} : vector<2x16xf32>, vector<16x16xf32>, vector<2x16xf32> -> vector<2x16xf32>
    %26 = arith.addf %24, %25 : vector<2x16xf32>
    %27 = math.tanh %26 : vector<2x16xf32>
    %28 = vector.extract_strided_slice %9 {offsets = [8, 0], sizes = [2, 16], strides = [1, 1]} : vector<16x16xf32> to vector<2x16xf32>
    %cst_17 = arith.constant dense<0.000000e+00> : vector<2x16xf32>
    %29 = tpu.matmul %27, %4, %cst_17 {dimension_numbers = #tpu.dot_dimension_numbers<[1], [0], [0], [1], [0, 0, 1, 1], [], []>} : vector<2x16xf32>, vector<16x16xf32>, vector<2x16xf32> -> vector<2x16xf32>
    %30 = arith.addf %28, %29 : vector<2x16xf32>
    %31 = math.tanh %30 : vector<2x16xf32>
    %32 = vector.extract_strided_slice %9 {offsets = [10, 0], sizes = [2, 16], strides = [1, 1]} : vector<16x16xf32> to vector<2x16xf32>
    %cst_18 = arith.constant dense<0.000000e+00> : vector<2x16xf32>
    %33 = tpu.matmul %31, %4, %cst_18 {dimension_numbers = #tpu.dot_dimension_numbers<[1], [0], [0], [1], [0, 0, 1, 1], [], []>} : vector<2x16xf32>, vector<16x16xf32>, vector<2x16xf32> -> vector<2x16xf32>
    %34 = arith.addf %32, %33 : vector<2x16xf32>
    %35 = math.tanh %34 : vector<2x16xf32>
    %36 = vector.extract_strided_slice %9 {offsets = [12, 0], sizes = [2, 16], strides = [1, 1]} : vector<16x16xf32> to vector<2x16xf32>
    %cst_19 = arith.constant dense<0.000000e+00> : vector<2x16xf32>
    %37 = tpu.matmul %35, %4, %cst_19 {dimension_numbers = #tpu.dot_dimension_numbers<[1], [0], [0], [1], [0, 0, 1, 1], [], []>} : vector<2x16xf32>, vector<16x16xf32>, vector<2x16xf32> -> vector<2x16xf32>
    %38 = arith.addf %36, %37 : vector<2x16xf32>
    %39 = math.tanh %38 : vector<2x16xf32>
    %40 = vector.extract_strided_slice %9 {offsets = [14, 0], sizes = [2, 16], strides = [1, 1]} : vector<16x16xf32> to vector<2x16xf32>
    %cst_20 = arith.constant dense<0.000000e+00> : vector<2x16xf32>
    %41 = tpu.matmul %39, %4, %cst_20 {dimension_numbers = #tpu.dot_dimension_numbers<[1], [0], [0], [1], [0, 0, 1, 1], [], []>} : vector<2x16xf32>, vector<16x16xf32>, vector<2x16xf32> -> vector<2x16xf32>
    %42 = arith.addf %40, %41 : vector<2x16xf32>
    %43 = math.tanh %42 : vector<2x16xf32>
    %c0_21 = arith.constant 0 : index
    %c0_22 = arith.constant 0 : index
    %c0_23 = arith.constant 0 : index
    %44 = vector.load %arg8[%c0_21, %c0_22, %c0_23] : memref<3x2x16xf32, #tpu.memory_space<vmem>>, vector<1x2x16xf32>
    %45 = vector.shape_cast %44 : vector<1x2x16xf32> to vector<2x16xf32>
    %46 = vector.shape_cast %43 : vector<2x16xf32> to vector<1x2x16xf32>
    tpu.vector_store %arg8[%c0_21, %c0_22, %c0_23], %46 {strides = array<i32>} : memref<3x2x16xf32, #tpu.memory_space<vmem>>, vector<1x2x16xf32>,
    %47 = tpu.concatenate %15, %19, %23, %27, %31, %35, %39, %43 in 0 : vector<2x16xf32>, vector<2x16xf32>, vector<2x16xf32>, vector<2x16xf32>, vector<2x16xf32>, vector<2x16xf32>, vector<2x16xf32>, vector<2x16xf32> -> vector<16x16xf32>
    %c1 = arith.constant 1 : index
    %c0_24 = arith.constant 0 : index
    %c0_25 = arith.constant 0 : index
    %48 = vector.load %arg2[%c1, %c0_24, %c0_25] : memref<3x16x16xf32, #tpu.memory_space<vmem>>, vector<1x16x16xf32>
    %49 = vector.shape_cast %48 : vector<1x16x16xf32> to vector<16x16xf32>
    %c1_26 = arith.constant 1 : index
    %c0_27 = arith.constant 0 : index
    %c0_28 = arith.constant 0 : index
    %50 = vector.load %arg3[%c1_26, %c0_27, %c0_28] : memref<3x16x16xf32, #tpu.memory_space<vmem>>, vector<1x16x16xf32>
    %51 = vector.shape_cast %50 : vector<1x16x16xf32> to vector<16x16xf32>
    %cst_29 = arith.constant dense<0.000000e+00> : vector<16x16xf32>
    %52 = tpu.matmul %47, %49, %cst_29 {dimension_numbers = #tpu.dot_dimension_numbers<[1], [0], [0], [1], [0, 0, 1, 1], [], []>} : vector<16x16xf32>, vector<16x16xf32>, vector<16x16xf32> -> vector<16x16xf32>
    %c1_30 = arith.constant 1 : index
    %c0_31 = arith.constant 0 : index
    %c0_32 = arith.constant 0 : index
    %53 = vector.load %arg4[%c1_30, %c0_31, %c0_32] : memref<3x1x16xf32, #tpu.memory_space<vmem>>, vector<1x1x16xf32>
    %54 = vector.shape_cast %53 : vector<1x1x16xf32> to vector<1x16xf32>
    %55 = vector.broadcast %54 : vector<1x16xf32> to vector<16x16xf32>
    %56 = arith.addf %52, %55 : vector<16x16xf32>
    %c1_33 = arith.constant 1 : index
    %c0_34 = arith.constant 0 : index
    %c0_35 = arith.constant 0 : index
    %57 = vector.load %arg1[%c1_33, %c0_34, %c0_35] : memref<3x2x16xf32, #tpu.memory_space<vmem>>, vector<1x2x16xf32>
    %58 = vector.shape_cast %57 : vector<1x2x16xf32> to vector<2x16xf32>
    %59 = vector.extract_strided_slice %56 {offsets = [0, 0], sizes = [2, 16], strides = [1, 1]} : vector<16x16xf32> to vector<2x16xf32>
    %cst_36 = arith.constant dense<0.000000e+00> : vector<2x16xf32>
    %60 = tpu.matmul %58, %51, %cst_36 {dimension_numbers = #tpu.dot_dimension_numbers<[1], [0], [0], [1], [0, 0, 1, 1], [], []>} : vector<2x16xf32>, vector<16x16xf32>, vector<2x16xf32> -> vector<2x16xf32>
    %61 = arith.addf %59, %60 : vector<2x16xf32>
    %62 = math.tanh %61 : vector<2x16xf32>
    %63 = vector.extract_strided_slice %56 {offsets = [2, 0], sizes = [2, 16], strides = [1, 1]} : vector<16x16xf32> to vector<2x16xf32>
    %cst_37 = arith.constant dense<0.000000e+00> : vector<2x16xf32>
    %64 = tpu.matmul %62, %51, %cst_37 {dimension_numbers = #tpu.dot_dimension_numbers<[1], [0], [0], [1], [0, 0, 1, 1], [], []>} : vector<2x16xf32>, vector<16x16xf32>, vector<2x16xf32> -> vector<2x16xf32>
    %65 = arith.addf %63, %64 : vector<2x16xf32>
    %66 = math.tanh %65 : vector<2x16xf32>
    %67 = vector.extract_strided_slice %56 {offsets = [4, 0], sizes = [2, 16], strides = [1, 1]} : vector<16x16xf32> to vector<2x16xf32>
    %cst_38 = arith.constant dense<0.000000e+00> : vector<2x16xf32>
    %68 = tpu.matmul %66, %51, %cst_38 {dimension_numbers = #tpu.dot_dimension_numbers<[1], [0], [0], [1], [0, 0, 1, 1], [], []>} : vector<2x16xf32>, vector<16x16xf32>, vector<2x16xf32> -> vector<2x16xf32>
    %69 = arith.addf %67, %68 : vector<2x16xf32>
    %70 = math.tanh %69 : vector<2x16xf32>
    %71 = vector.extract_strided_slice %56 {offsets = [6, 0], sizes = [2, 16], strides = [1, 1]} : vector<16x16xf32> to vector<2x16xf32>
    %cst_39 = arith.constant dense<0.000000e+00> : vector<2x16xf32>
    %72 = tpu.matmul %70, %51, %cst_39 {dimension_numbers = #tpu.dot_dimension_numbers<[1], [0], [0], [1], [0, 0, 1, 1], [], []>} : vector<2x16xf32>, vector<16x16xf32>, vector<2x16xf32> -> vector<2x16xf32>
    %73 = arith.addf %71, %72 : vector<2x16xf32>
    %74 = math.tanh %73 : vector<2x16xf32>
    %75 = vector.extract_strided_slice %56 {offsets = [8, 0], sizes = [2, 16], strides = [1, 1]} : vector<16x16xf32> to vector<2x16xf32>
    %cst_40 = arith.constant dense<0.000000e+00> : vector<2x16xf32>
    %76 = tpu.matmul %74, %51, %cst_40 {dimension_numbers = #tpu.dot_dimension_numbers<[1], [0], [0], [1], [0, 0, 1, 1], [], []>} : vector<2x16xf32>, vector<16x16xf32>, vector<2x16xf32> -> vector<2x16xf32>
    %77 = arith.addf %75, %76 : vector<2x16xf32>
    %78 = math.tanh %77 : vector<2x16xf32>
    %79 = vector.extract_strided_slice %56 {offsets = [10, 0], sizes = [2, 16], strides = [1, 1]} : vector<16x16xf32> to vector<2x16xf32>
    %cst_41 = arith.constant dense<0.000000e+00> : vector<2x16xf32>
    %80 = tpu.matmul %78, %51, %cst_41 {dimension_numbers = #tpu.dot_dimension_numbers<[1], [0], [0], [1], [0, 0, 1, 1], [], []>} : vector<2x16xf32>, vector<16x16xf32>, vector<2x16xf32> -> vector<2x16xf32>
    %81 = arith.addf %79, %80 : vector<2x16xf32>
    %82 = math.tanh %81 : vector<2x16xf32>
    %83 = vector.extract_strided_slice %56 {offsets = [12, 0], sizes = [2, 16], strides = [1, 1]} : vector<16x16xf32> to vector<2x16xf32>
    %cst_42 = arith.constant dense<0.000000e+00> : vector<2x16xf32>
    %84 = tpu.matmul %82, %51, %cst_42 {dimension_numbers = #tpu.dot_dimension_numbers<[1], [0], [0], [1], [0, 0, 1, 1], [], []>} : vector<2x16xf32>, vector<16x16xf32>, vector<2x16xf32> -> vector<2x16xf32>
    %85 = arith.addf %83, %84 : vector<2x16xf32>
    %86 = math.tanh %85 : vector<2x16xf32>
    %87 = vector.extract_strided_slice %56 {offsets = [14, 0], sizes = [2, 16], strides = [1, 1]} : vector<16x16xf32> to vector<2x16xf32>
    %cst_43 = arith.constant dense<0.000000e+00> : vector<2x16xf32>
    %88 = tpu.matmul %86, %51, %cst_43 {dimension_numbers = #tpu.dot_dimension_numbers<[1], [0], [0], [1], [0, 0, 1, 1], [], []>} : vector<2x16xf32>, vector<16x16xf32>, vector<2x16xf32> -> vector<2x16xf32>
    %89 = arith.addf %87, %88 : vector<2x16xf32>
    %90 = math.tanh %89 : vector<2x16xf32>
    %c1_44 = arith.constant 1 : index
    %c0_45 = arith.constant 0 : index
    %c0_46 = arith.constant 0 : index
    %91 = vector.load %arg8[%c1_44, %c0_45, %c0_46] : memref<3x2x16xf32, #tpu.memory_space<vmem>>, vector<1x2x16xf32>
    %92 = vector.shape_cast %91 : vector<1x2x16xf32> to vector<2x16xf32>
    %93 = vector.shape_cast %90 : vector<2x16xf32> to vector<1x2x16xf32>
    tpu.vector_store %arg8[%c1_44, %c0_45, %c0_46], %93 {strides = array<i32>} : memref<3x2x16xf32, #tpu.memory_space<vmem>>, vector<1x2x16xf32>,
    %94 = tpu.concatenate %62, %66, %70, %74, %78, %82, %86, %90 in 0 : vector<2x16xf32>, vector<2x16xf32>, vector<2x16xf32>, vector<2x16xf32>, vector<2x16xf32>, vector<2x16xf32>, vector<2x16xf32>, vector<2x16xf32> -> vector<16x16xf32>
    %c2 = arith.constant 2 : index
    %c0_47 = arith.constant 0 : index
    %c0_48 = arith.constant 0 : index
    %95 = vector.load %arg2[%c2, %c0_47, %c0_48] : memref<3x16x16xf32, #tpu.memory_space<vmem>>, vector<1x16x16xf32>
    %96 = vector.shape_cast %95 : vector<1x16x16xf32> to vector<16x16xf32>
    %c2_49 = arith.constant 2 : index
    %c0_50 = arith.constant 0 : index
    %c0_51 = arith.constant 0 : index
    %97 = vector.load %arg3[%c2_49, %c0_50, %c0_51] : memref<3x16x16xf32, #tpu.memory_space<vmem>>, vector<1x16x16xf32>
    %98 = vector.shape_cast %97 : vector<1x16x16xf32> to vector<16x16xf32>
    %cst_52 = arith.constant dense<0.000000e+00> : vector<16x16xf32>
    %99 = tpu.matmul %94, %96, %cst_52 {dimension_numbers = #tpu.dot_dimension_numbers<[1], [0], [0], [1], [0, 0, 1, 1], [], []>} : vector<16x16xf32>, vector<16x16xf32>, vector<16x16xf32> -> vector<16x16xf32>
    %c2_53 = arith.constant 2 : index
    %c0_54 = arith.constant 0 : index
    %c0_55 = arith.constant 0 : index
    %100 = vector.load %arg4[%c2_53, %c0_54, %c0_55] : memref<3x1x16xf32, #tpu.memory_space<vmem>>, vector<1x1x16xf32>
    %101 = vector.shape_cast %100 : vector<1x1x16xf32> to vector<1x16xf32>
    %102 = vector.broadcast %101 : vector<1x16xf32> to vector<16x16xf32>
    %103 = arith.addf %99, %102 : vector<16x16xf32>
    %c2_56 = arith.constant 2 : index
    %c0_57 = arith.constant 0 : index
    %c0_58 = arith.constant 0 : index
    %104 = vector.load %arg1[%c2_56, %c0_57, %c0_58] : memref<3x2x16xf32, #tpu.memory_space<vmem>>, vector<1x2x16xf32>
    %105 = vector.shape_cast %104 : vector<1x2x16xf32> to vector<2x16xf32>
    %106 = vector.extract_strided_slice %103 {offsets = [0, 0], sizes = [2, 16], strides = [1, 1]} : vector<16x16xf32> to vector<2x16xf32>
    %cst_59 = arith.constant dense<0.000000e+00> : vector<2x16xf32>
    %107 = tpu.matmul %105, %98, %cst_59 {dimension_numbers = #tpu.dot_dimension_numbers<[1], [0], [0], [1], [0, 0, 1, 1], [], []>} : vector<2x16xf32>, vector<16x16xf32>, vector<2x16xf32> -> vector<2x16xf32>
    %108 = arith.addf %106, %107 : vector<2x16xf32>
    %109 = math.tanh %108 : vector<2x16xf32>
    %110 = vector.extract_strided_slice %103 {offsets = [2, 0], sizes = [2, 16], strides = [1, 1]} : vector<16x16xf32> to vector<2x16xf32>
    %cst_60 = arith.constant dense<0.000000e+00> : vector<2x16xf32>
    %111 = tpu.matmul %109, %98, %cst_60 {dimension_numbers = #tpu.dot_dimension_numbers<[1], [0], [0], [1], [0, 0, 1, 1], [], []>} : vector<2x16xf32>, vector<16x16xf32>, vector<2x16xf32> -> vector<2x16xf32>
    %112 = arith.addf %110, %111 : vector<2x16xf32>
    %113 = math.tanh %112 : vector<2x16xf32>
    %114 = vector.extract_strided_slice %103 {offsets = [4, 0], sizes = [2, 16], strides = [1, 1]} : vector<16x16xf32> to vector<2x16xf32>
    %cst_61 = arith.constant dense<0.000000e+00> : vector<2x16xf32>
    %115 = tpu.matmul %113, %98, %cst_61 {dimension_numbers = #tpu.dot_dimension_numbers<[1], [0], [0], [1], [0, 0, 1, 1], [], []>} : vector<2x16xf32>, vector<16x16xf32>, vector<2x16xf32> -> vector<2x16xf32>
    %116 = arith.addf %114, %115 : vector<2x16xf32>
    %117 = math.tanh %116 : vector<2x16xf32>
    %118 = vector.extract_strided_slice %103 {offsets = [6, 0], sizes = [2, 16], strides = [1, 1]} : vector<16x16xf32> to vector<2x16xf32>
    %cst_62 = arith.constant dense<0.000000e+00> : vector<2x16xf32>
    %119 = tpu.matmul %117, %98, %cst_62 {dimension_numbers = #tpu.dot_dimension_numbers<[1], [0], [0], [1], [0, 0, 1, 1], [], []>} : vector<2x16xf32>, vector<16x16xf32>, vector<2x16xf32> -> vector<2x16xf32>
    %120 = arith.addf %118, %119 : vector<2x16xf32>
    %121 = math.tanh %120 : vector<2x16xf32>
    %122 = vector.extract_strided_slice %103 {offsets = [8, 0], sizes = [2, 16], strides = [1, 1]} : vector<16x16xf32> to vector<2x16xf32>
    %cst_63 = arith.constant dense<0.000000e+00> : vector<2x16xf32>
    %123 = tpu.matmul %121, %98, %cst_63 {dimension_numbers = #tpu.dot_dimension_numbers<[1], [0], [0], [1], [0, 0, 1, 1], [], []>} : vector<2x16xf32>, vector<16x16xf32>, vector<2x16xf32> -> vector<2x16xf32>
    %124 = arith.addf %122, %123 : vector<2x16xf32>
    %125 = math.tanh %124 : vector<2x16xf32>
    %126 = vector.extract_strided_slice %103 {offsets = [10, 0], sizes = [2, 16], strides = [1, 1]} : vector<16x16xf32> to vector<2x16xf32>
    %cst_64 = arith.constant dense<0.000000e+00> : vector<2x16xf32>
    %127 = tpu.matmul %125, %98, %cst_64 {dimension_numbers = #tpu.dot_dimension_numbers<[1], [0], [0], [1], [0, 0, 1, 1], [], []>} : vector<2x16xf32>, vector<16x16xf32>, vector<2x16xf32> -> vector<2x16xf32>
    %128 = arith.addf %126, %127 : vector<2x16xf32>
    %129 = math.tanh %128 : vector<2x16xf32>
    %130 = vector.extract_strided_slice %103 {offsets = [12, 0], sizes = [2, 16], strides = [1, 1]} : vector<16x16xf32> to vector<2x16xf32>
    %cst_65 = arith.constant dense<0.000000e+00> : vector<2x16xf32>
    %131 = tpu.matmul %129, %98, %cst_65 {dimension_numbers = #tpu.dot_dimension_numbers<[1], [0], [0], [1], [0, 0, 1, 1], [], []>} : vector<2x16xf32>, vector<16x16xf32>, vector<2x16xf32> -> vector<2x16xf32>
    %132 = arith.addf %130, %131 : vector<2x16xf32>
    %133 = math.tanh %132 : vector<2x16xf32>
    %134 = vector.extract_strided_slice %103 {offsets = [14, 0], sizes = [2, 16], strides = [1, 1]} : vector<16x16xf32> to vector<2x16xf32>
    %cst_66 = arith.constant dense<0.000000e+00> : vector<2x16xf32>
    %135 = tpu.matmul %133, %98, %cst_66 {dimension_numbers = #tpu.dot_dimension_numbers<[1], [0], [0], [1], [0, 0, 1, 1], [], []>} : vector<2x16xf32>, vector<16x16xf32>, vector<2x16xf32> -> vector<2x16xf32>
    %136 = arith.addf %134, %135 : vector<2x16xf32>
    %137 = math.tanh %136 : vector<2x16xf32>
    %c2_67 = arith.constant 2 : index
    %c0_68 = arith.constant 0 : index
    %c0_69 = arith.constant 0 : index
    %138 = vector.load %arg8[%c2_67, %c0_68, %c0_69] : memref<3x2x16xf32, #tpu.memory_space<vmem>>, vector<1x2x16xf32>
    %139 = vector.shape_cast %138 : vector<1x2x16xf32> to vector<2x16xf32>
    %140 = vector.shape_cast %137 : vector<2x16xf32> to vector<1x2x16xf32>
    tpu.vector_store %arg8[%c2_67, %c0_68, %c0_69], %140 {strides = array<i32>} : memref<3x2x16xf32, #tpu.memory_space<vmem>>, vector<1x2x16xf32>,
    %141 = tpu.concatenate %109, %113, %117, %121, %125, %129, %133, %137 in 0 : vector<2x16xf32>, vector<2x16xf32>, vector<2x16xf32>, vector<2x16xf32>, vector<2x16xf32>, vector<2x16xf32>, vector<2x16xf32>, vector<2x16xf32> -> vector<16x16xf32>
    %c0_70 = arith.constant 0 : index
    %c0_71 = arith.constant 0 : index
    %142 = vector.load %arg5[%c0_70, %c0_71] : memref<1x16xf32, #tpu.memory_space<vmem>>, vector<1x16xf32>
    %143 = vector.broadcast %142 : vector<1x16xf32> to vector<16x16xf32>
    %144 = arith.mulf %141, %143 : vector<16x16xf32>
    %cst_72 = arith.constant dense<0.000000e+00> : vector<16xf32>
    %145 = vector.multi_reduction <add>, %144, %cst_72 [1] : vector<16x16xf32> to vector<16xf32>
    %146 = vector.shape_cast %145 : vector<16xf32> to vector<16x1xf32>
    %c0_73 = arith.constant 0 : index
    %c0_74 = arith.constant 0 : index
    %147 = vector.load %arg6[%c0_73, %c0_74] : memref<1x1xf32, #tpu.memory_space<vmem>>, vector<1x1xf32>
    %148 = vector.broadcast %147 : vector<1x1xf32> to vector<16x1xf32>
    %149 = arith.addf %146, %148 : vector<16x1xf32>
    %c0_75 = arith.constant 0 : index
    %c0_76 = arith.constant 0 : index
    %150 = vector.load %arg7[%c0_75, %c0_76] : memref<16x1xf32, #tpu.memory_space<vmem>>, vector<16x1xf32>
    tpu.vector_store %arg7[%c0_75, %c0_76], %149 {strides = array<i32>} : memref<16x1xf32, #tpu.memory_space<vmem>>, vector<16x1xf32>,
    return
  }
}

</mosaic_0001>

<bundles_post_ra>
// kernel: tpu_custom_call.1
= control target key start
LH: loop header
LB: loop body
LE: loop exit
PB: predicated region body
PF: predicated region fallthrough
CT: control target
= control target key end

     0   :  { %s1342_s0 = inlined_call_operand.hbm [shape: f32[16,16], index: 0, kind: input, shape index: {}]   ;;  %s1343_s1 = inlined_call_operand.hbm [shape: f32[3,2,16], index: 1, kind: input, shape index: {}]   ;;  %s1344_s2 = inlined_call_operand.hbm [shape: f32[3,16,16], index: 2, kind: input, shape index: {}]   ;;  %s1345_s3 = inlined_call_operand.hbm [shape: f32[3,16,16], index: 3, kind: input, shape index: {}]   ;;  %s1346_s4 = inlined_call_operand.vmem [shape: f32[3,1,16], index: 4, kind: input, shape index: {}]   ;;  %s1347_s5 = inlined_call_operand.vmem [shape: f32[1,16], index: 5, kind: input, shape index: {}]   ;;  %s1348_s6 = inlined_call_operand.<no memory space> [shape: f32[1,1], index: 6, kind: input, shape index: {}]   ;;  %s1349_s7 = inlined_call_operand.vmem [shape: f32[16,1], index: 7, kind: output, shape index: {0}]   ;;  %s1350_s8 = inlined_call_operand.hbm [shape: f32[3,2,16], index: 8, kind: output, shape index: {1}]  }
   0x1   :  { %v14_v0 = vstv %s1348_s6 }
   0x2   :  { %15 = vst [vmem:[#allocation2] sm:$0x1] %v14_v0 }
   0x3   :  { %16 = vsyncpa [#allocation4], 0 }
   0x4   :  { %17 = vsyncpa [#allocation7], 0 }
   0x5   :  { %18 = vsyncpa [#allocation10], 0  ;;  %s37_s9 = sshll.u32 %s1343_s1, 4  ;;  %s38_s9 = int_to_ptr.hbm [resolvable:$true] %s37_s9 }
   0x6   :  { %19 = vsyncpa [#allocation5], 0  ;;  %s1183_s10 = smov [#allocation6]   ;;  %s24_s14 = sshll.u32 %s1342_s0, 4  ;;  %s25_s14 = int_to_ptr.hbm [resolvable:$true] %s24_s14 }
   0x7   :  { %s39_s11 = sshll.u32 %s1183_s10, 4  ;;  %s1184_s15 = smov 32   ;;  %s40_s11 = int_to_ptr.vmem [resolvable:$true] %s39_s11 }
   0x8   :  { %s1185_s16 = smov 2   ;;  %s1186_s6 = smov [#allocation3]  }
   0x9   :  { %45 = dma.hbm_to_vmem [thread:$0]  %s38_s9, 96, %s40_s11, [#allocation7], %s1184_s15, %s1184_s15, %s1185_s16  }
   0xa   :  { %s26_s17 = sshll.u32 %s1186_s6, 4  ;;  %s1187_s1 = smov 128   ;;  %s27_s17 = int_to_ptr.vmem [resolvable:$true] %s26_s17 }
   0xb   :  { %s1188_s18 = smov 8   ;;  %s50_s21 = sshll.u32 %s1344_s2, 4  ;;  %s51_s21 = int_to_ptr.hbm [resolvable:$true] %s50_s21 }
   0xc   :  { %32 = dma.hbm_to_vmem [thread:$0]  %s25_s14, 256, %s27_s17, [#allocation4], %s1187_s1, %s1187_s1, %s1188_s18  }
   0xd   :  { %s1189_s22 = smov [#allocation8]   ;;  %s63_s25 = sshll.u32 %s1345_s3, 4  ;;  %s64_s25 = int_to_ptr.hbm [resolvable:$true] %s63_s25 }
   0xe   :  { %s52_s0 = sshll.u32 %s1189_s22, 4  ;;  %s1190_s26 = smov [#allocation9]   ;;  %s53_s0 = int_to_ptr.vmem [resolvable:$true] %s52_s0 }
   0xf   :  { %58 = dma.hbm_to_vmem [thread:$0]  %s51_s21, 768, %s53_s0, [#allocation7], %s1187_s1, %s1187_s1, %s1188_s18  }
  0x10   :  { %s65_s27 = sshll.u32 %s1190_s26, 4  ;;  %s66_s27 = int_to_ptr.vmem [resolvable:$true] %s65_s27 }
  0x11   :  { %71 = dma.hbm_to_vmem [thread:$0]  %s64_s25, 768, %s66_s27, [#allocation10], %s1187_s1, %s1187_s1, %s1188_s18  }
  0x12   :  { %1175 = dma.done.wait [#allocation4], 256  }
  0x13   :  { %1176 = vsyncadd [#allocation4], 4294967040 }
  0x14   :  { %1177 = dma.done.wait [#allocation7], 864  }
  0x15   :  { %1178 = vsyncadd [#allocation7], 4294966432 }
  0x16   :  { %1179 = dma.done.wait [#allocation10], 768  }
  0x17   :  { %1180 = vsyncadd [#allocation10], 4294966528  ;;  %v97_v1 = vld [vmem:[#allocation8 + $0x8] sm:$0xff]  ;;  %v96_v2 = vld [vmem:[#allocation8] sm:$0xff]  ;;  %vm104_vm0 = vcmask 130048   ;;  %vm360_vm1 = vcmask 1041408  }
  0x18   :  { %v99_v3 = vld [vmem:[#allocation9 + $0x8] sm:$0xff]  ;;  %125 = vmatpush.msra.mxu0 %v97_v1  ;;  %v94_v4 = vld [vmem:[#allocation3] sm:$0xff]  ;;  %v1002_v7 = vld [vmem:[%s1346_s4] ss:$0 sm:$0xff]  ;;  %vm362_vm2 = vcmask 1043456   ;;  %vm364_vm3 = vcmask 1045504  }
  0x19   :  { %152 = vmatpush.msra.mxu1 %v99_v3  ;;  %v98_v5 = vld [vmem:[#allocation9] sm:$0xff]  ;;  %v134_v6 = vld [vmem:[#allocation6] sm:$0x3]  ;;  %177 = vmatpush.msra.mxu2 %v99_v3  ;;  %v374_v34 = vld [vmem:[#allocation9 + $0x18] sm:$0xff]  ;;  %vm358_vm4 = vcmask 130054   ;;  %vm933_vm5 = vcmask 7168  }
  0x1a   :  { %206 = vmatpush.msra.mxu3 %v99_v3  ;;  %126 = vmatpush.msra.mxu0 %v96_v2  ;;  %v95_v25 = vld [vmem:[#allocation3 + $0x8] sm:$0xff]  ;;  %v373_v35 = vld [vmem:[#allocation9 + $0x10] sm:$0xff]  ;;  %v410_v41 = vld [vmem:[#allocation6 + $0x2] sm:$0x3]  ;;  %s944_s17 = sshll.u32 %s1350_s8, 4  ;;  %s945_s17 = int_to_ptr.hbm [resolvable:$true] %s944_s17 }
  0x1b   :  { %153 = vmatpush.msra.mxu1 %v98_v5  ;;  %961 = vmatmul.msk.f32.vlgmr.msra.gmra.mxu0 %vm104_vm0, %v94_v4  ;;  %v371_v26 = vld [vmem:[#allocation8 + $0x18] sm:$0xff]  ;;  %v370_v27 = vld [vmem:[#allocation8 + $0x10] sm:$0xff]  ;;  %v1274_v45 = vld [vmem:[%s1346_s4 + $0x1] ss:$0 sm:$0xff] }
  0x1c   :  { %963 = vmatmul.msk.f32.vlgmr.msra.gmra.mxu1 %vm104_vm0, %v134_v6  ;;  %178 = vmatpush.msra.mxu2 %v98_v5 }
  0x1d   :  { %207 = vmatpush.msra.mxu3 %v98_v5  ;;  %235 = vmatpush.msrb.mxu1 %v99_v3 }
  0x1e   :  { %264 = vmatpush.msrb.mxu2 %v99_v3  ;;  %318 = vmatpush.msrb.mxu0 %v99_v3 }
  0x1f   :  { %289 = vmatpush.msrb.mxu3 %v99_v3  ;;  %236 = vmatpush.msrb.mxu1 %v98_v5 }
  0x20   :  { %265 = vmatpush.msrb.mxu2 %v98_v5  ;;  %319 = vmatpush.msrb.mxu0 %v98_v5 }
  0x21   :  { %290 = vmatpush.msrb.mxu3 %v98_v5  ;;  %347 = vmatpush.msra.mxu1 %v99_v3 }
  0x22   :  { %453 = vmatpush.msra.mxu0 %v374_v34 }
  0x23   :  { %348 = vmatpush.msra.mxu1 %v98_v5  ;;  %962 = vmatmul.msk.f32.gmra.mxu0 %vm104_vm0, %v95_v25 }
  0x24   :  { %454 = vmatpush.msra.mxu0 %v373_v35 }
  0x98   :  { %v128_v8 = vpop.f32.mrf.mxu0 }
  0x99   :  { %v155_v9 = vpop.f32.mrf.mxu1  ;;  %v129_v10 = vadd.f32 %v1002_v7, %v128_v8 }
  0x9b   :  { %v158_v11 = vadd.f32 %v155_v9, %v129_v10 }
  0x9d   :  { %1007 = vtanh.f32 %v158_v11 }
  0xa0   :  { %v131_v36 = vpop.f32.mrf.mxu0 }
  0xa1   :  { %v132_v37 = vadd.f32 %v1002_v7, %v131_v36 }
  0xa3   :  { %v1008_v12 = vpop.eup %1007 }
  0xa4   :  { %964 = vmatmul.msk.f32.vlgmr.msra.gmra.mxu2 %vm104_vm0, %v1008_v12 }
  0xa5   :  { %400 = vmatpush.msra.mxu2 %v371_v26 }
  0xa7   :  { %401 = vmatpush.msra.mxu2 %v370_v27 }
 0x127   :  { %v180_v13 = vpop.f32.mrf.mxu2 }
 0x128   :  { %v184_v14 = vrot.slane %v180_v13, 6  ;;  %v644_v13 = vld [vmem:[#allocation8 + $0x28] sm:$0xff] }
 0x12a   :  { %v186_v15 = vadd.f32 %v184_v14, %v129_v10  ;;  %v643_v14 = vld [vmem:[#allocation8 + $0x20] sm:$0xff] }
 0x12c   :  { %1009 = vtanh.f32 %v186_v15 }
 0x132   :  { %v1010_v16 = vpop.eup %1009 }
 0x133   :  { %v189_v17 = vrot.slane %v1010_v16, 2  ;;  %v361_v22 = vsel %vm360_vm1, %v1008_v12, %v1010_v16 }
 0x135   :  { %965 = vmatmul.msk.f32.vlgmr.msra.gmra.mxu3 %vm104_vm0, %v189_v17 }
 0x136   :  { %428 = vmatpush.msra.mxu3 %v374_v34 }
 0x138   :  { %429 = vmatpush.msra.mxu3 %v373_v35 }
 0x1b8   :  { %v209_v18 = vpop.f32.mrf.mxu3 }
 0x1b9   :  { %v213_v19 = vrot.slane %v209_v18, 4 }
 0x1bb   :  { %v215_v20 = vadd.f32 %v213_v19, %v129_v10 }
 0x1bd   :  { %1011 = vtanh.f32 %v215_v20 }
 0x1c3   :  { %v1012_v21 = vpop.eup %1011 }
 0x1c4   :  { %v218_v23 = vrot.slane %v1012_v21, 4  ;;  %v363_v24 = vsel %vm362_vm2, %v361_v22, %v1012_v21  ;;  %v647_v21 = vld [vmem:[#allocation9 + $0x28] sm:$0xff]  ;;  %v646_v22 = vld [vmem:[#allocation9 + $0x20] sm:$0xff] }
 0x1c6   :  { %966 = vmatmul.msk.f32.vlgmr.msrb.gmra.mxu1 %vm104_vm0, %v218_v23 }
 0x1c7   :  { %482 = vmatpush.msrb.mxu1 %v374_v34 }
 0x1c9   :  { %483 = vmatpush.msrb.mxu1 %v373_v35 }
 0x243   :  { %v238_v28 = vpop.f32.mrf.mxu1 }
 0x244   :  { %v242_v29 = vrot.slane %v238_v28, 2  ;;  %v683_v28 = vld [vmem:[#allocation6 + $0x4] sm:$0x3] }
 0x246   :  { %v244_v30 = vadd.f32 %v242_v29, %v129_v10 }
 0x248   :  { %1013 = vtanh.f32 %v244_v30 }
 0x24e   :  { %v1014_v31 = vpop.eup %1013 }
 0x24f   :  { %v247_v32 = vrot.slane %v1014_v31, 6  ;;  %v365_v33 = vsel %vm364_vm3, %v363_v24, %v1014_v31 }
 0x251   :  { %967 = vmatmul.msk.f32.vlgmr.msrb.gmra.mxu2 %vm104_vm0, %v247_v32  ;;  %v1298_v32 = vld [vmem:[%s1346_s4 + $0x2] ss:$0 sm:$0xff] }
 0x252   :  { %594 = vmatpush.msrb.mxu2 %v374_v34 }
 0x254   :  { %595 = vmatpush.msrb.mxu2 %v373_v35 }
 0x259   :  { %972 = vmatmul.msk.f32.vlgmr.msra.gmra.mxu2 %vm104_vm0, %v365_v33 }
 0x25a   :  { %726 = vmatpush.msra.mxu2 %v647_v21 }
 0x25c   :  { %727 = vmatpush.msra.mxu2 %v646_v22 }
 0x2d4   :  { %v267_v38 = vpop.f32.mrf.mxu2 }
 0x2d5   :  { %v270_v39 = vadd.f32 %v267_v38, %v132_v37 }
 0x2d7   :  { %1015 = vtanh.f32 %v270_v39 }
 0x2dc   :  { %v403_v46 = vpop.f32.mrf.mxu2 }
 0x2dd   :  { %v1016_v40 = vpop.eup %1015  ;;  %v404_v48 = vadd.f32 %v1274_v45, %v403_v46 }
 0x2de   :  { %968 = vmatmul.msk.f32.vlgmr.msrb.gmra.mxu3 %vm104_vm0, %v1016_v40 }
 0x2df   :  { %511 = vmatpush.msrb.mxu3 %v374_v34 }
 0x2e1   :  { %512 = vmatpush.msrb.mxu3 %v373_v35 }
 0x2e6   :  { %974 = vmatmul.msk.f32.vlgmr.msra.gmra.mxu3 %vm104_vm0, %v410_v41 }
 0x2e7   :  { %623 = vmatpush.msra.mxu3 %v374_v34 }
 0x2e9   :  { %624 = vmatpush.msra.mxu3 %v373_v35 }
 0x361   :  { %v292_v42 = vpop.f32.mrf.mxu3 }
 0x362   :  { %v296_v43 = vrot.slane %v292_v42, 6 }
 0x364   :  { %v298_v44 = vadd.f32 %v296_v43, %v132_v37 }
 0x366   :  { %1017 = vtanh.f32 %v298_v44 }
 0x369   :  { %v431_v47 = vpop.f32.mrf.mxu3 }
 0x36a   :  { %v434_v50 = vadd.f32 %v431_v47, %v404_v48 }
 0x36c   :  { %v1018_v49 = vpop.eup %1017  ;;  %1019 = vtanh.f32 %v434_v50 }
 0x36d   :  { %v301_v51 = vrot.slane %v1018_v49, 2  ;;  %v366_v60 = vsel %vm360_vm1, %v1016_v40, %v1018_v49 }
 0x36f   :  { %969 = vmatmul.msk.f32.vlgmr.msrb.gmra.mxu0 %vm104_vm0, %v301_v51 }
 0x370   :  { %540 = vmatpush.msrb.mxu0 %v374_v34 }
 0x372   :  { %541 = vmatpush.msrb.mxu0 %v373_v35  ;;  %v1020_v52 = vpop.eup %1019 }
 0x377   :  { %975 = vmatmul.msk.f32.vlgmr.msra.gmra.mxu0 %vm104_vm0, %v1020_v52 }
 0x378   :  { %673 = vmatpush.msra.mxu0 %v644_v13 }
 0x37a   :  { %674 = vmatpush.msra.mxu0 %v643_v14 }
 0x3ec   :  { %v321_v53 = vpop.f32.mrf.mxu0 }
 0x3ed   :  { %v325_v54 = vrot.slane %v321_v53, 4 }
 0x3ef   :  { %v327_v55 = vadd.f32 %v325_v54, %v132_v37 }
 0x3f1   :  { %1021 = vtanh.f32 %v327_v55 }
 0x3f4   :  { %v456_v56 = vpop.f32.mrf.mxu0 }
 0x3f5   :  { %v460_v57 = vrot.slane %v456_v56, 6 }
 0x3f7   :  { %v1022_v58 = vpop.eup %1021  ;;  %v462_v59 = vadd.f32 %v460_v57, %v404_v48 }
 0x3f8   :  { %v330_v61 = vrot.slane %v1022_v58, 4  ;;  %v367_v62 = vsel %vm362_vm2, %v366_v60, %v1022_v58 }
 0x3f9   :  { %1023 = vtanh.f32 %v462_v59 }
 0x3fa   :  { %970 = vmatmul.msk.f32.vlgmr.msra.gmra.mxu1 %vm104_vm0, %v330_v61 }
 0x3fb   :  { %565 = vmatpush.msra.mxu1 %v374_v34 }
 0x3fd   :  { %566 = vmatpush.msra.mxu1 %v373_v35 }
 0x3ff   :  { %v1024_v63 = vpop.eup %1023 }
 0x400   :  { %v465_v0 = vrot.slane %v1024_v63, 2  ;;  %v636_v10 = vsel %vm360_vm1, %v1020_v52, %v1024_v63 }
 0x402   :  { %976 = vmatmul.msk.f32.vlgmr.msrb.gmra.mxu1 %vm104_vm0, %v465_v0 }
 0x403   :  { %701 = vmatpush.msrb.mxu1 %v647_v21 }
 0x405   :  { %702 = vmatpush.msrb.mxu1 %v646_v22 }
 0x477   :  { %v350_v1 = vpop.f32.mrf.mxu1 }
 0x478   :  { %v354_v2 = vrot.slane %v350_v1, 2 }
 0x47a   :  { %v356_v3 = vadd.f32 %v354_v2, %v132_v37 }
 0x47c   :  { %1025 = vtanh.f32 %v356_v3  ;;  %v1005_v3 = vld [vmem:[%s1347_s5] ss:$0 sm:$0xff]  ;;  %s1191_s5 = smov [#allocation11]  }
 0x47d   :  { %s942_s13 = sshll.u32 %s1191_s5, 4  ;;  %s943_s13 = int_to_ptr.vmem [resolvable:$true] %s942_s13 }
 0x47f   :  { %v485_v4 = vpop.f32.mrf.mxu1 }
 0x480   :  { %v489_v5 = vrot.slane %v485_v4, 4 }
 0x482   :  { %v1026_v6 = vpop.eup %1025  ;;  %v491_v7 = vadd.f32 %v489_v5, %v404_v48 }
 0x483   :  { %v368_v8 = vsel %vm364_vm3, %v367_v62, %v1026_v6  ;;  %359 = vst.msk [vmem:[#allocation11 - $0x6] sm:$0xc0] %vm358_vm4, %v1026_v6 }
 0x484   :  { %1027 = vtanh.f32 %v491_v7  ;;  %973 = vmatmul.msk.f32.gmra.mxu2 %vm104_vm0, %v368_v8 }
 0x48a   :  { %v1028_v9 = vpop.eup %1027 }
 0x48b   :  { %v494_v11 = vrot.slane %v1028_v9, 4  ;;  %v637_v12 = vsel %vm362_vm2, %v636_v10, %v1028_v9  ;;  %v1006_v9 = vld [vmem:[#allocation2] ss:$0 sm:$0xff] }
 0x48d   :  { %977 = vmatmul.msk.f32.vlgmr.msrb.gmra.mxu3 %vm104_vm0, %v494_v11 }
 0x48e   :  { %755 = vmatpush.msrb.mxu3 %v647_v21 }
 0x490   :  { %756 = vmatpush.msrb.mxu3 %v646_v22 }
 0x507   :  { %v406_v23 = vpop.f32.mrf.mxu2 }
 0x508   :  { %v407_v24 = vadd.f32 %v1274_v45, %v406_v23 }
 0x510   :  { %v514_v15 = vpop.f32.mrf.mxu3 }
 0x511   :  { %v518_v16 = vrot.slane %v514_v15, 2 }
 0x513   :  { %v520_v17 = vadd.f32 %v518_v16, %v404_v48 }
 0x515   :  { %1029 = vtanh.f32 %v520_v17 }
 0x51b   :  { %v1030_v18 = vpop.eup %1029 }
 0x51c   :  { %v523_v19 = vrot.slane %v1030_v18, 6  ;;  %v638_v20 = vsel %vm364_vm3, %v637_v12, %v1030_v18 }
 0x51e   :  { %978 = vmatmul.msk.f32.vlgmr.msrb.gmra.mxu0 %vm104_vm0, %v523_v19 }
 0x51f   :  { %867 = vmatpush.msrb.mxu0 %v647_v21 }
 0x521   :  { %868 = vmatpush.msrb.mxu0 %v646_v22 }
 0x526   :  { %983 = vmatmul.msk.f32.vlgmr.msra.gmra.mxu0 %vm104_vm0, %v638_v20 }
 0x59b   :  { %v543_v25 = vpop.f32.mrf.mxu0 }
 0x59c   :  { %v546_v26 = vadd.f32 %v543_v25, %v407_v24 }
 0x59e   :  { %1031 = vtanh.f32 %v546_v26 }
 0x5a3   :  { %v676_v33 = vpop.f32.mrf.mxu0 }
 0x5a4   :  { %v1032_v27 = vpop.eup %1031  ;;  %v677_v35 = vadd.f32 %v1298_v32, %v676_v33 }
 0x5a5   :  { %979 = vmatmul.msk.f32.vlgmr.msra.gmra.mxu1 %vm104_vm0, %v1032_v27 }
 0x5a6   :  { %784 = vmatpush.msra.mxu1 %v647_v21 }
 0x5a8   :  { %785 = vmatpush.msra.mxu1 %v646_v22 }
 0x5ad   :  { %985 = vmatmul.msk.f32.vlgmr.msrb.gmra.mxu1 %vm104_vm0, %v683_v28 }
 0x5ae   :  { %896 = vmatpush.msrb.mxu1 %v647_v21 }
 0x5b0   :  { %897 = vmatpush.msrb.mxu1 %v646_v22 }
 0x622   :  { %v568_v29 = vpop.f32.mrf.mxu1 }
 0x623   :  { %v572_v30 = vrot.slane %v568_v29, 6 }
 0x625   :  { %v574_v31 = vadd.f32 %v572_v30, %v407_v24 }
 0x627   :  { %1033 = vtanh.f32 %v574_v31 }
 0x62a   :  { %v704_v34 = vpop.f32.mrf.mxu1 }
 0x62b   :  { %v707_v37 = vadd.f32 %v704_v34, %v677_v35 }
 0x62d   :  { %v1034_v36 = vpop.eup %1033  ;;  %1035 = vtanh.f32 %v707_v37 }
 0x62e   :  { %v577_v38 = vrot.slane %v1034_v36, 2  ;;  %v639_v47 = vsel %vm360_vm1, %v1032_v27, %v1034_v36 }
 0x630   :  { %980 = vmatmul.msk.f32.vlgmr.msrb.gmra.mxu2 %vm104_vm0, %v577_v38 }
 0x631   :  { %813 = vmatpush.msrb.mxu2 %v647_v21 }
 0x633   :  { %814 = vmatpush.msrb.mxu2 %v646_v22  ;;  %v1036_v39 = vpop.eup %1035 }
 0x638   :  { %986 = vmatmul.msk.f32.vlgmr.msra.gmra.mxu2 %vm104_vm0, %v1036_v39 }
 0x6b3   :  { %v597_v40 = vpop.f32.mrf.mxu2 }
 0x6b4   :  { %v601_v41 = vrot.slane %v597_v40, 4 }
 0x6b6   :  { %v603_v42 = vadd.f32 %v601_v41, %v407_v24 }
 0x6b8   :  { %1037 = vtanh.f32 %v603_v42 }
 0x6bb   :  { %v729_v43 = vpop.f32.mrf.mxu2 }
 0x6bc   :  { %v733_v44 = vrot.slane %v729_v43, 6 }
 0x6be   :  { %v1038_v45 = vpop.eup %1037  ;;  %v735_v46 = vadd.f32 %v733_v44, %v677_v35 }
 0x6bf   :  { %v606_v48 = vrot.slane %v1038_v45, 4  ;;  %v640_v49 = vsel %vm362_vm2, %v639_v47, %v1038_v45 }
 0x6c0   :  { %1039 = vtanh.f32 %v735_v46 }
 0x6c1   :  { %981 = vmatmul.msk.f32.vlgmr.msra.gmra.mxu3 %vm104_vm0, %v606_v48 }
 0x6c2   :  { %838 = vmatpush.msra.mxu3 %v647_v21 }
 0x6c4   :  { %839 = vmatpush.msra.mxu3 %v646_v22 }
 0x6c6   :  { %v1040_v50 = vpop.eup %1039 }
 0x6c7   :  { %v738_v51 = vrot.slane %v1040_v50, 2  ;;  %v909_v61 = vsel %vm360_vm1, %v1036_v39, %v1040_v50 }
 0x6c9   :  { %987 = vmatmul.msk.f32.vlgmr.msrb.gmra.mxu3 %vm104_vm0, %v738_v51 }
 0x744   :  { %v626_v52 = vpop.f32.mrf.mxu3 }
 0x745   :  { %v630_v53 = vrot.slane %v626_v52, 2 }
 0x747   :  { %v632_v54 = vadd.f32 %v630_v53, %v407_v24 }
 0x749   :  { %1041 = vtanh.f32 %v632_v54 }
 0x74c   :  { %v758_v55 = vpop.f32.mrf.mxu3 }
 0x74d   :  { %v762_v56 = vrot.slane %v758_v55, 4 }
 0x74f   :  { %v1042_v57 = vpop.eup %1041  ;;  %v764_v58 = vadd.f32 %v762_v56, %v677_v35 }
 0x750   :  { %v641_v59 = vsel %vm364_vm3, %v640_v49, %v1042_v57  ;;  %635 = vst.msk [vmem:[#allocation11 - $0x4] sm:$0xc0] %vm358_vm4, %v1042_v57 }
 0x751   :  { %1043 = vtanh.f32 %v764_v58  ;;  %984 = vmatmul.msk.f32.gmra.mxu0 %vm104_vm0, %v641_v59 }
 0x757   :  { %v1044_v60 = vpop.eup %1043 }
 0x758   :  { %v767_v62 = vrot.slane %v1044_v60, 4  ;;  %v910_v63 = vsel %vm362_vm2, %v909_v61, %v1044_v60 }
 0x75a   :  { %988 = vmatmul.msk.f32.vlgmr.msra.gmra.mxu1 %vm104_vm0, %v767_v62 }
 0x7ce   :  { %v679_v12 = vpop.f32.mrf.mxu0 }
 0x7cf   :  { %v680_v13 = vadd.f32 %v1298_v32, %v679_v12 }
 0x7d7   :  { %v787_v0 = vpop.f32.mrf.mxu1 }
 0x7d8   :  { %v791_v1 = vrot.slane %v787_v0, 2 }
 0x7da   :  { %v793_v2 = vadd.f32 %v791_v1, %v677_v35 }
 0x7dc   :  { %1045 = vtanh.f32 %v793_v2 }
 0x7e2   :  { %v1046_v4 = vpop.eup %1045 }
 0x7e3   :  { %v796_v5 = vrot.slane %v1046_v4, 6  ;;  %v911_v6 = vsel %vm364_vm3, %v910_v63, %v1046_v4 }
 0x7e4   :  { %v919_v7 = vmul.f32 %v1005_v3, %v911_v6 }
 0x7e5   :  { %989 = vmatmul.msk.f32.vlgmr.msrb.gmra.mxu2 %vm104_vm0, %v796_v5 }
 0x7e6   :  { %v921_v8 = vsel %vm104_vm0, %v919_v7, 0.0 }
 0x7e7   :  { %922 = vadd.xlane.f32.xlu0 %v921_v8 }
 0x85a   :  { %v923_v10 = vpop.xlane.xlu0 %922 }
 0x85b   :  { %v931_v11 = vadd.f32 %v1006_v9, %v923_v10 }
 0x85d   :  { %934 = vst.msk [vmem:[%s1349_s7] sm:$0xff] %vm933_vm5, %v931_v11 }
 0x868   :  { %v816_v14 = vpop.f32.mrf.mxu2 }
 0x869   :  { %v819_v15 = vadd.f32 %v816_v14, %v680_v13 }
 0x86b   :  { %1047 = vtanh.f32 %v819_v15 }
 0x871   :  { %v1048_v16 = vpop.eup %1047 }
 0x872   :  { %990 = vmatmul.msk.f32.vlgmr.msra.gmra.mxu3 %vm104_vm0, %v1048_v16 }
 0x8f5   :  { %v841_v17 = vpop.f32.mrf.mxu3 }
 0x8f6   :  { %v845_v18 = vrot.slane %v841_v17, 6 }
 0x8f8   :  { %v847_v19 = vadd.f32 %v845_v18, %v680_v13 }
 0x8fa   :  { %1049 = vtanh.f32 %v847_v19 }
 0x900   :  { %v1050_v20 = vpop.eup %1049 }
 0x901   :  { %v850_v21 = vrot.slane %v1050_v20, 2  ;;  %v912_v26 = vsel %vm360_vm1, %v1048_v16, %v1050_v20 }
 0x903   :  { %991 = vmatmul.msk.f32.vlgmr.msrb.gmra.mxu0 %vm104_vm0, %v850_v21 }
 0x980   :  { %v870_v22 = vpop.f32.mrf.mxu0 }
 0x981   :  { %v874_v23 = vrot.slane %v870_v22, 4 }
 0x983   :  { %v876_v24 = vadd.f32 %v874_v23, %v680_v13 }
 0x985   :  { %1051 = vtanh.f32 %v876_v24 }
 0x98b   :  { %v1052_v25 = vpop.eup %1051 }
 0x98c   :  { %v879_v27 = vrot.slane %v1052_v25, 4  ;;  %v913_v28 = vsel %vm362_vm2, %v912_v26, %v1052_v25 }
 0x98e   :  { %992 = vmatmul.msk.f32.vlgmr.msrb.gmra.mxu1 %vm104_vm0, %v879_v27 }
 0xa0b   :  { %v899_v29 = vpop.f32.mrf.mxu1 }
 0xa0c   :  { %v903_v30 = vrot.slane %v899_v29, 2 }
 0xa0e   :  { %v905_v31 = vadd.f32 %v903_v30, %v680_v13 }
 0xa10   :  { %1053 = vtanh.f32 %v905_v31 }
 0xa16   :  { %v1054_v32 = vpop.eup %1053 }
 0xa17   :  { %v914_v33 = vsel %vm364_vm3, %v913_v28, %v1054_v32  ;;  %908 = vst.msk [vmem:[#allocation11 - $0x2] sm:$0xc0] %vm358_vm4, %v1054_v32 }
 0xa18   :  { %v920_v34 = vmul.f32 %v1005_v3, %v914_v33  ;;  %950 = dma.vmem_to_hbm [thread:$0]  %s943_s13, 96, %s945_s17, [#allocation5], %s1184_s15, %s1184_s15, %s1185_s16  }
 0xa1a   :  { %v924_v35 = vsel %vm104_vm0, %v920_v34, 0.0 }
 0xa1b   :  { %925 = vadd.xlane.f32.xlu0 %v924_v35 }
 0xa8e   :  { %v926_v36 = vpop.xlane.xlu0 %925 }
 0xa8f   :  { %v932_v37 = vadd.f32 %v1006_v9, %v926_v36 }
 0xa91   :  { %935 = vst.msk [vmem:[%s1349_s7 + $0x8] sm:$0xff] %vm933_vm5, %v932_v37 }
 0xa92   :  { %1181 = dma.done.wait [#allocation5], 96  }
 0xa93   :  { %1182 = vsyncadd [#allocation5], 4294967200 }
 0xa94   :  { %957 = vsyncpa [#allocation4], 1 }
 0xa95   :  { %958 = vsyncpa [#allocation7], 1 }
 0xa96   :  { %959 = vsyncpa [#allocation10], 1 }
 0xa97   :  { %960 = vsyncpa [#allocation5], 1 }

</bundles_post_ra>
